<compile_context>
chip_gen: v6e
topology: v6e:2x2x1
jax: 0.10.0
libtpu: 0.0.40
codegen_flags: <defaults>
</compile_context>

<pallas_src>
import math

import jax
import jax.numpy as jnp
from jax.experimental import pallas as pl
from jax.experimental.pallas import tpu as pltpu


def _round_up(x, m):
    return ((x + m - 1) // m) * m


def _pick_tile(dim, align, cap):
    """Largest tile <= cap that is a multiple of `align` and divides
    round_up(dim, align). Returns (tile, padded_dim)."""
    padded = _round_up(max(int(dim), 1), align)
    t = min(_round_up(int(cap), align), padded)
    while padded % t != 0:
        t -= align
    return int(t), int(padded)


# --------------------------------------------------------------------------
# Kernels
# --------------------------------------------------------------------------
def _linear_kernel_single_k(x_ref, w_ref, b_ref, o_ref):
    # Whole K fits in one tile: no scratch accumulator, no pl.when branches.
    acc = jnp.dot(x_ref[...], w_ref[...], preferred_element_type=jnp.float32)
    o_ref[...] = (acc + b_ref[...]).astype(o_ref.dtype)


def _linear_kernel_acc(x_ref, w_ref, b_ref, o_ref, acc_ref):
    # x_ref: (tm, tk), w_ref: (tk, tn), b_ref: (1, tn) f32, o_ref: (tm, tn)
    k = pl.program_id(2)

    @pl.when(k == 0)
    def _():
        # Fold the bias into the accumulator init (added exactly once).
        acc_ref[...] = jnp.broadcast_to(b_ref[...], acc_ref.shape)

    acc_ref[...] += jnp.dot(
        x_ref[...], w_ref[...], preferred_element_type=jnp.float32
    )

    @pl.when(k == pl.num_programs(2) - 1)
    def _():
        o_ref[...] = acc_ref[...].astype(o_ref.dtype)


# --------------------------------------------------------------------------
# Parameter preparation (done ONCE, outside the per-call hot path)
# --------------------------------------------------------------------------
def prepare_linear_norm_params(
    weight_t,
    bias=None,
    *,
    compute_dtype=jnp.bfloat16,
    tn_cap=512,
    tk_cap=1024,
):
    """Cast + pad the (in_dim, out_dim) weight and bias once, pick N/K tiles."""
    in_dim, out_dim = weight_t.shape
    tk, kp = _pick_tile(in_dim, 128, tk_cap)
    tn, np_ = _pick_tile(out_dim, 128, tn_cap)

    w = weight_t.astype(compute_dtype)
    if (kp, np_) != (in_dim, out_dim):
        w = jnp.pad(w, ((0, kp - in_dim), (0, np_ - out_dim)))

    if bias is None:
        # TODO(synk): gate the bias add entirely when bias=False instead of a zero block.
        b = jnp.zeros((1, np_), dtype=jnp.float32)
    else:
        b = bias.astype(jnp.float32).reshape(1, out_dim)
        if np_ != out_dim:
            b = jnp.pad(b, ((0, 0), (0, np_ - out_dim)))

    return {
        "weight": w,          # (Kp, Np) in compute_dtype, padded once
        "bias": b,            # (1, Np) f32, padded once
        "in_dim": in_dim,
        "out_dim": out_dim,
        "tk": tk,
        "tn": tn,
    }


# --------------------------------------------------------------------------
# Forward
# --------------------------------------------------------------------------
def linear_norm_forward(x, params, *, tm_cap=512):
    """y = x @ W + b with x: (..., in_dim). Output dtype == x.dtype."""
    in_dim = params["in_dim"]
    out_dim = params["out_dim"]
    w = params["weight"]
    b = params["bias"]
    kp, np_ = w.shape
    tk, tn = params["tk"], params["tn"]
    compute_dtype = w.dtype
    out_dtype = x.dtype

    lead_shape = x.shape[:-1]
    m = int(math.prod(lead_shape)) if lead_shape else 1

    # Sublane alignment: 16 rows for 16-bit compute dtypes (packed vregs), 8 for f32.
    m_align = 16 if jnp.dtype(compute_dtype).itemsize == 2 else 8
    tm, mp = _pick_tile(m, m_align, tm_cap)

    x2d = x.reshape(m, in_dim).astype(compute_dtype)
    if mp != m or kp != in_dim:
        x2d = jnp.pad(x2d, ((0, mp - m), (0, kp - in_dim)))

    grid_i, grid_j, grid_k = mp // tm, np_ // tn, kp // tk

    # v7x megacore: if everything landed in a single (i, j) block but the block
    # is large, split tm so both TensorCores get a "parallel" block.
    if grid_i == 1 and grid_j == 1 and tm >= 256 and (tm // 2) % m_align == 0:
        tm //= 2
        grid_i = mp // tm

    flops = 2 * m * in_dim * out_dim
    bytes_accessed = (
        mp * kp * x2d.dtype.itemsize * grid_j        # x re-streamed per j block
        + kp * np_ * w.dtype.itemsize * grid_i       # W re-streamed per i block
        + np_ * b.dtype.itemsize
        + mp * np_ * jnp.dtype(out_dtype).itemsize
    )
    cost = pl.CostEstimate(
        flops=flops, transcendentals=0, bytes_accessed=bytes_accessed
    )

    if grid_k == 1:
        # ---- single-K fast path: 2-D grid, no scratch accumulator ----
        out = pl.pallas_call(
            _linear_kernel_single_k,
            out_shape=jax.ShapeDtypeStruct((mp, np_), out_dtype),
            grid_spec=pltpu.PrefetchScalarGridSpec(
                num_scalar_prefetch=0,
                grid=(grid_i, grid_j),
                in_specs=[
                    pl.BlockSpec((tm, kp), lambda i, j: (i, 0)),
                    pl.BlockSpec((kp, tn), lambda i, j: (0, j)),
                    pl.BlockSpec((1, tn), lambda i, j: (0, j)),
                ],
                out_specs=pl.BlockSpec((tm, tn), lambda i, j: (i, j)),
            ),
            compiler_params=pltpu.CompilerParams(
                dimension_semantics=("parallel", "parallel"),
            ),
            cost_estimate=cost,
        )(x2d, w, b)
    else:
        # ---- general path: 3-D grid, resident f32 accumulator over K ----
        out = pl.pallas_call(
            _linear_kernel_acc,
            out_shape=jax.ShapeDtypeStruct((mp, np_), out_dtype),
            grid_spec=pltpu.PrefetchScalarGridSpec(
                num_scalar_prefetch=0,
                grid=(grid_i, grid_j, grid_k),
                in_specs=[
                    pl.BlockSpec((tm, tk), lambda i, j, k: (i, k)),
                    pl.BlockSpec((tk, tn), lambda i, j, k: (k, j)),
                    # Bias depends only on j -> stays resident across i/k.
                    pl.BlockSpec((1, tn), lambda i, j, k: (0, j)),
                ],
                out_specs=pl.BlockSpec((tm, tn), lambda i, j, k: (i, j)),
                scratch_shapes=[pltpu.VMEM((tm, tn), jnp.float32)],
            ),
            compiler_params=pltpu.CompilerParams(
                dimension_semantics=("parallel", "parallel", "arbitrary"),
            ),
            cost_estimate=cost,
        )(x2d, w, b)

    if mp != m or np_ != out_dim:
        out = out[:m, :out_dim]
    return out.reshape(*lead_shape, out_dim)


# --------------------------------------------------------------------------
# Init matching torch.nn.Linear + xavier_uniform_
# --------------------------------------------------------------------------
def init_linear_norm_params(key, in_dim, out_dim, w_init_gain="linear"):
    gain = 1.0  # calculate_gain('linear') == 1.0
    bound = gain * math.sqrt(6.0 / (in_dim + out_dim))
    kw, kb = jax.random.split(key)
    # PyTorch weight shape is (out_dim, in_dim); we store its transpose.
    weight_t = jax.random.uniform(
        kw, (in_dim, out_dim), dtype=jnp.float32, minval=-bound, maxval=bound
    )
    # torch.nn.Linear default bias init: U(-1/sqrt(in_dim), 1/sqrt(in_dim))
    b_bound = 1.0 / math.sqrt(in_dim)
    bias = jax.random.uniform(
        kb, (out_dim,), dtype=jnp.float32, minval=-b_bound, maxval=b_bound
    )
    return weight_t, bias


if __name__ == "__main__":
    key = jax.random.PRNGKey(0)
    k_x, k_p, k_x2, k_p2 = jax.random.split(key, 4)

    # ---- Test 1: single-K fast path (small LinearNorm) ----
    batch, seq, in_dim, out_dim = 2, 8, 32, 64
    x = jax.random.normal(k_x, (batch, seq, in_dim), dtype=jnp.float32)
    weight_t, bias = init_linear_norm_params(k_p, in_dim, out_dim)

    params = prepare_linear_norm_params(weight_t, bias)  # bf16 compute, padded once
    y = jax.block_until_ready(linear_norm_forward(x, params))

    # Reference with the same bf16 input rounding, f32 accumulation.
    y_ref = (
        x.astype(jnp.bfloat16).astype(jnp.float32)
        @ weight_t.astype(jnp.bfloat16).astype(jnp.float32)
        + bias
    )
    assert y.shape == (batch, seq, out_dim)
    assert jnp.allclose(y, y_ref, atol=1e-3, rtol=1e-3)

    # ---- Test 2: exercise the K-accumulator kernel (force tk smaller than K) ----
    in_dim2, out_dim2 = 256, 128
    x2 = jax.random.normal(k_x2, (batch, seq, in_dim2), dtype=jnp.float32)
    weight_t2, bias2 = init_linear_norm_params(k_p2, in_dim2, out_dim2)
    params2 = prepare_linear_norm_params(weight_t2, bias2, tk_cap=128, tn_cap=128)
    y2 = jax.block_until_ready(linear_norm_forward(x2, params2))
    y2_ref = (
        x2.astype(jnp.bfloat16).astype(jnp.float32)
        @ weight_t2.astype(jnp.bfloat16).astype(jnp.float32)
        + bias2
    )
    assert y2.shape == (batch, seq, out_dim2)
    assert jnp.allclose(y2, y2_ref, atol=2e-3, rtol=2e-3)

    print("KERNEL_OK")
</pallas_src>

<mosaic_0001>
module attributes {stable_mosaic.version = 11 : i64} {
  func.func @_linear_kernel_single_k(%arg0: i32, %arg1: i32, %arg2: memref<16x128xbf16, #tpu.memory_space<vmem>>, %arg3: memref<128x128xbf16, #tpu.memory_space<vmem>>, %arg4: memref<1x128xf32, #tpu.memory_space<vmem>>, %arg5: memref<16x128xf32, #tpu.memory_space<vmem>>) attributes {dimension_semantics = [#tpu.dimension_semantics<parallel>, #tpu.dimension_semantics<parallel>], iteration_bounds = array<i64: 1, 1>, scalar_prefetch = 0 : i64, scratch_operands = 0 : i64, tpu.core_type = #tpu.core_type<tc>, window_params = [{transform_indices = @transform_0, window_bounds = array<i64: 16, 128>}, {transform_indices = @transform_1, window_bounds = array<i64: 128, 128>}, {transform_indices = @transform_2, window_bounds = array<i64: 1, 128>}, {transform_indices = @transform_3, window_bounds = array<i64: 16, 128>}]} {
    %c0 = arith.constant 0 : index
    %c0_0 = arith.constant 0 : index
    %0 = vector.load %arg2[%c0, %c0_0] : memref<16x128xbf16, #tpu.memory_space<vmem>>, vector<16x128xbf16>
    %c0_1 = arith.constant 0 : index
    %c0_2 = arith.constant 0 : index
    %1 = vector.load %arg3[%c0_1, %c0_2] : memref<128x128xbf16, #tpu.memory_space<vmem>>, vector<128x128xbf16>
    %cst = arith.constant dense<0.000000e+00> : vector<16x128xf32>
    %2 = tpu.matmul %0, %1, %cst {dimension_numbers = #tpu.dot_dimension_numbers<[1], [0], [0], [1], [0, 0, 1, 1], [], []>} : vector<16x128xbf16>, vector<128x128xbf16>, vector<16x128xf32> -> vector<16x128xf32>
    %c0_3 = arith.constant 0 : index
    %c0_4 = arith.constant 0 : index
    %3 = vector.load %arg4[%c0_3, %c0_4] : memref<1x128xf32, #tpu.memory_space<vmem>>, vector<1x128xf32>
    %4 = vector.broadcast %3 : vector<1x128xf32> to vector<16x128xf32>
    %5 = arith.addf %2, %4 : vector<16x128xf32>
    %c0_5 = arith.constant 0 : index
    %c0_6 = arith.constant 0 : index
    %6 = vector.load %arg5[%c0_5, %c0_6] : memref<16x128xf32, #tpu.memory_space<vmem>>, vector<16x128xf32>
    tpu.vector_store %arg5[%c0_5, %c0_6], %5 {strides = array<i32>} : memref<16x128xf32, #tpu.memory_space<vmem>>, vector<16x128xf32>,
    return
  }
  func.func @transform_0(%arg0: i32, %arg1: i32) -> (i32, i32) {
    %c0_i32 = arith.constant 0 : i32
    %c0_i32_0 = arith.constant 0 : i32
    return %arg0, %c0_i32 : i32, i32
  }
  func.func @transform_1(%arg0: i32, %arg1: i32) -> (i32, i32) {
    %c0_i32 = arith.constant 0 : i32
    %c0_i32_0 = arith.constant 0 : i32
    return %c0_i32, %arg1 : i32, i32
  }
  func.func @transform_2(%arg0: i32, %arg1: i32) -> (i32, i32) {
    %c0_i32 = arith.constant 0 : i32
    %c0_i32_0 = arith.constant 0 : i32
    return %c0_i32, %arg1 : i32, i32
  }
  func.func @transform_3(%arg0: i32, %arg1: i32) -> (i32, i32) {
    %c0_i32 = arith.constant 0 : i32
    return %arg0, %arg1 : i32, i32
  }
}

</mosaic_0001>

<bundles_post_ra>
// kernel: tpu_custom_call.1
= control target key start
LH: loop header
LB: loop body
LE: loop exit
PB: predicated region body
PF: predicated region fallthrough
CT: control target
= control target key end

     0   :  { %8 = vsyncpa [#allocation3], 0  ;;  %s348_s0 = inlined_call_operand.hbm [shape: bf16[16,128], index: 0, kind: input, shape index: {}]   ;;  %s349_s1 = inlined_call_operand.hbm [shape: bf16[128,128], index: 1, kind: input, shape index: {}]   ;;  %s350_s2 = inlined_call_operand.vmem [shape: f32[1,128], index: 2, kind: input, shape index: {}]   ;;  %s351_s3 = inlined_call_operand.hbm [shape: f32[16,128], index: 3, kind: output, shape index: {}]  }
   0x1   :  { %9 = vsyncpa [#allocation6], 0 }
   0x2   :  { %10 = vsyncpa [#allocation4], 0  ;;  %s307_s12 = smov [#allocation2]  }
   0x3   :  { %s16_s13 = sshll.u32 %s307_s12, 4  ;;  %s17_s13 = int_to_ptr.vmem [resolvable:$true] %s16_s13 }
   0x4   :  { %s249_s14 = scalar_lea.vmem %s17_s13, 128  ;;  %p254_p1 = scmp.lt.s32.totalorder %s17_s13, %s17_s13 }
   0x5   :  { %p250_p0 = scmp.ne.s32.totalorder %s17_s13, %s249_s14  ;;  %p255_p2 = scmp.lt.s32.totalorder %s249_s14, %s249_s14 }
   0x7   :  { %p256_p3 = por %p255_p2, %p254_p1 }
   0x9   :  { %p257_p4 = pnand %p256_p3, %p250_p0 }
   0xb   :  { %260 = shalt.err (!%p257_p4)
}
   0xc   :  { %s308_s15 = smov 64   ;;  %s309_s16 = smov 4  }
   0xd   :  { %22 = dma.hbm_to_vmem [thread:$0]  %s348_s0, 128, %s17_s13, [#allocation3], %s308_s15, %s308_s15, %s309_s16  }
   0xe   :  { %s310_s19 = smov [#allocation5]  }
   0xf   :  { %s28_s20 = sshll.u32 %s310_s19, 4  ;;  %s29_s20 = int_to_ptr.vmem [resolvable:$true] %s28_s20 }
  0x10   :  { %s269_s21 = scalar_lea.vmem %s29_s20, 1024  ;;  %p274_p6 = scmp.lt.s32.totalorder %s29_s20, %s29_s20 }
  0x11   :  { %p270_p5 = scmp.ne.s32.totalorder %s29_s20, %s269_s21  ;;  %p275_p7 = scmp.lt.s32.totalorder %s269_s21, %s269_s21 }
  0x13   :  { %p276_p8 = por %p275_p7, %p274_p6 }
  0x15   :  { %p277_p9 = pnand %p276_p8, %p270_p5 }
  0x17   :  { %280 = shalt.err (!%p277_p9)
}
  0x18   :  { %34 = dma.hbm_to_vmem [thread:$0]  %s349_s1, 1024, %s29_s20, [#allocation6], %s308_s15, %s308_s15, %s309_s16  }
  0x19   :  { %301 = dma.done.wait [#allocation3], 128  }
  0x1a   :  { %302 = vsyncadd [#allocation3], 4294967168 }
  0x1b   :  { %303 = dma.done.wait [#allocation6], 1024  }
  0x1c   :  { %304 = vsyncadd [#allocation6], 4294966272  ;;  %v311_v0 = vmov 0.0   ;;  %vm312_vm0 = vmmov 0   ;;  %v232_v1 = vld [vmem:[#allocation5 + $0x38] sm:$0xff]   ;;  %v233_v2 = vld [vmem:[#allocation5 + $0x30] sm:$0xff]  }
  0x1d   :  { %203 = vmatprep.subr.bf16.mxu0 %v311_v0  ;;  %219 = vmatprep.mubr.msk.bf16.mxu0 %vm312_vm0, %v311_v0  ;;  %v234_v3 = vld [vmem:[#allocation5 + $0x28] sm:$0xff]   ;;  %v235_v4 = vld [vmem:[#allocation5 + $0x20] sm:$0xff]   ;;  %v236_v5 = vld [vmem:[#allocation5 + $0x18] sm:$0xff]   ;;  %s313_s24 = smov [#allocation7]  }
  0x1e   :  { %204 = vmatpush3.bf16.msra.mxu0 %v232_v1  ;;  %v237_v6 = vld [vmem:[#allocation5 + $0x10] sm:$0xff]   ;;  %v238_v7 = vld [vmem:[#allocation5 + $0x8] sm:$0xff]   ;;  %v239_v8 = vld [vmem:[#allocation5] sm:$0xff]   ;;  %s171_s25 = sshll.u32 %s313_s24, 4  ;;  %s172_s25 = int_to_ptr.vmem [resolvable:$true] %s171_s25 }
  0x1f   :  { %205 = vmatprep.subr.bf16.mxu0 %v311_v0  ;;  %v240_v9 = vld [vmem:[#allocation2] sm:$0xff]   ;;  %s281_s26 = scalar_lea.vmem %s172_s25, 256  ;;  %p286_p11 = scmp.lt.s32.totalorder %s172_s25, %s172_s25 }
  0x20   :  { %v184_v10 = vld [vmem:[%s350_s2] ss:$0 sm:$0xff]  ;;  %p282_p10 = scmp.ne.s32.totalorder %s172_s25, %s281_s26  ;;  %p287_p12 = scmp.lt.s32.totalorder %s281_s26, %s281_s26 }
  0x22   :  { %206 = vmatpush3.bf16.msra.mxu0 %v233_v2  ;;  %p288_p13 = por %p287_p12, %p286_p11 }
  0x23   :  { %207 = vmatprep.subr.bf16.mxu0 %v311_v0 }
  0x24   :  { %p289_p0 = pnand %p288_p13, %p282_p10 }
  0x26   :  { %208 = vmatpush3.bf16.msra.mxu0 %v234_v3 }
  0x27   :  { %209 = vmatprep.subr.bf16.mxu0 %v311_v0 }
  0x2a   :  { %210 = vmatpush3.bf16.msra.mxu0 %v235_v4 }
  0x2b   :  { %211 = vmatprep.subr.bf16.mxu0 %v311_v0 }
  0x2e   :  { %212 = vmatpush3.bf16.msra.mxu0 %v236_v5 }
  0x2f   :  { %213 = vmatprep.subr.bf16.mxu0 %v311_v0 }
  0x32   :  { %214 = vmatpush3.bf16.msra.mxu0 %v237_v6 }
  0x33   :  { %215 = vmatprep.subr.bf16.mxu0 %v311_v0 }
  0x36   :  { %216 = vmatpush3.bf16.msra.mxu0 %v238_v7 }
  0x37   :  { %217 = vmatprep.subr.bf16.mxu0 %v311_v0 }
  0x3a   :  { %218 = vmatpush3.bf16.msra.mxu0 %v239_v8 }
  0x3d   :  { %220 = vmatmul.mubr.bf16.vlgmr.msra.gmra.mxu0 %v240_v9 }
  0xfd   :  { %v157_v11 = vpop.f32.mrf.mxu0 }
  0xfe   :  { %v158_v12 = vadd.f32 %v184_v10, %v157_v11 }
  0xff   :  { %v221_v13 = vpop.f32.mrf.mxu0 }
 0x100   :  { %164 = vst [vmem:[#allocation7] sm:$0xff] %v158_v12 }
 0x101   :  { %v160_v14 = vpop.f32.mrf.mxu0 }
 0x102   :  { %v161_v15 = vadd.f32 %v184_v10, %v160_v14 }
 0x103   :  { %v222_v16 = vpop.f32.mrf.mxu0 }
 0x104   :  { %165 = vst [vmem:[#allocation7 + $0x8] sm:$0xff] %v161_v15 }
 0x105   :  { %292 = shalt.err (!%p289_p0)
}
 0x106   :  { %s314_s27 = smov 128   ;;  %s315_s2 = smov 8  }
 0x107   :  { %177 = dma.vmem_to_hbm [thread:$0]  %s172_s25, 256, %s351_s3, [#allocation4], %s314_s27, %s314_s27, %s315_s2  }
 0x108   :  { %305 = dma.done.wait [#allocation4], 256  }
 0x109   :  { %306 = vsyncadd [#allocation4], 4294967040 }
 0x10a   :  { %181 = vsyncpa [#allocation3], 1 }
 0x10b   :  { %182 = vsyncpa [#allocation6], 1 }
 0x10c   :  { %183 = vsyncpa [#allocation4], 1 }

</bundles_post_ra>
